<compile_context>
chip_gen: v6e
topology: v6e:2x2x1
jax: 0.10.0
libtpu: 0.0.40
codegen_flags: <defaults>
</compile_context>

<pallas_src>
import functools
import math

import jax
import jax.numpy as jnp
from jax.experimental import pallas as pl
from jax.experimental.pallas import tpu as pltpu


_LN_EPS = 1e-5                      # torch.nn.LayerNorm default
_INV_SQRT2 = 1.0 / math.sqrt(2.0)


# ----------------------------------------------------------------------------- helpers
def _round_up(x, m):
    return ((x + m - 1) // m) * m


def _nbytes(a):
    return math.prod(a.shape) * jnp.dtype(a.dtype).itemsize


def _gelu_exact(x):
    # nn.GELU() default = exact erf formulation.
    return 0.5 * x * (1.0 + jax.lax.erf(x * _INV_SQRT2))


def _layer_norm(h, gamma, beta):
    mu = jnp.mean(h, axis=-1, keepdims=True)
    var = jnp.mean(jnp.square(h - mu), axis=-1, keepdims=True)
    return (h - mu) * jax.lax.rsqrt(var + _LN_EPS) * gamma + beta


def _row_spec(tm, cols):
    return pl.BlockSpec((tm, cols), lambda i: (i, 0))


def _const_spec(shape):
    # Whole-array operand with a constant block index: the pipeline does not re-fetch it
    # across grid steps, so weights stay VMEM-resident for the whole kernel.
    zero = (0,) * len(shape)
    return pl.BlockSpec(tuple(shape), lambda *_: zero)


def _vmem_limit(resident_bytes, tile_bytes):
    # resident blocks may be double-buffered by the pipeline; row tiles are double-buffered.
    need = 2 * resident_bytes + 4 * tile_bytes + (2 << 20)
    # Clamp: >= 32 MiB (above default scoped limits), <= 48 MiB (safe on v7x's 64 MiB VMEM).
    return int(min(max(need, 32 << 20), 48 << 20))


# ----------------------------------------------------------------------------- kernels
def _qkv_kernel(x_ref, wq_ref, wk_ref, wv_ref, bq_ref, bk_ref, bv_ref,
                q_ref, k_ref, v_ref):
    x = x_ref[...].astype(jnp.bfloat16)          # bf16 into the MXU, f32 accumulation
    q = jnp.dot(x, wq_ref[...], preferred_element_type=jnp.float32) + bq_ref[...]
    k = jnp.dot(x, wk_ref[...], preferred_element_type=jnp.float32) + bk_ref[...]
    v = jnp.dot(x, wv_ref[...], preferred_element_type=jnp.float32) + bv_ref[...]
    q_ref[...] = q.astype(q_ref.dtype)
    k_ref[...] = k.astype(k_ref.dtype)
    v_ref[...] = v.astype(v_ref.dtype)


def _mha_kernel(q_ref, k_ref, v_ref, m_ref, ctx_ref, attn_ref, *, scale):
    # Blocks are per-(batch, head); leading dims squeezed away -> refs are 2D.
    q = q_ref[...].astype(jnp.bfloat16)          # (L, E)
    k = k_ref[...].astype(jnp.bfloat16)          # (S, E)
    v = v_ref[...].astype(jnp.bfloat16)          # (S, E)
    s = jax.lax.dot_general(q, k, (((1,), (1,)), ((), ())),
                            preferred_element_type=jnp.float32)      # (L, S) = q @ k^T
    s = s * scale + m_ref[...]
    s = s - jnp.max(s, axis=-1, keepdims=True)
    p = jnp.exp(s)
    a = p / jnp.sum(p, axis=-1, keepdims=True)                        # f32 softmax
    attn_ref[...] = a.astype(attn_ref.dtype)
    ctx_ref[...] = jnp.dot(a.astype(jnp.bfloat16), v,
                           preferred_element_type=jnp.float32).astype(ctx_ref.dtype)


def _proj_add_ln_kernel(ctx_ref, res_ref, wo_ref, bo_ref, g_ref, b_ref, o_ref):
    ctx = ctx_ref[...].astype(jnp.bfloat16)
    h = jnp.dot(ctx, wo_ref[...], preferred_element_type=jnp.float32) + bo_ref[...]
    h = h + res_ref[...].astype(jnp.float32)     # residual (dropout = identity in eval)
    o_ref[...] = _layer_norm(h, g_ref[...], b_ref[...]).astype(o_ref.dtype)


def _ffn_add_ln_kernel(x_ref, w1_ref, b1_ref, w2_ref, b2_ref, g_ref, b_ref, o_ref):
    x_f32 = x_ref[...].astype(jnp.float32)
    h = jnp.dot(x_f32.astype(jnp.bfloat16), w1_ref[...],
                preferred_element_type=jnp.float32) + b1_ref[...]
    h = _gelu_exact(h)                           # GELU (exact erf), kept in f32; MXU-bound at
    y = jnp.dot(h.astype(jnp.bfloat16), w2_ref[...],                # large tm so it's filler
                preferred_element_type=jnp.float32) + b2_ref[...]
    y = _gelu_exact(y)                           # module applies GELU after layer2 too
    o_ref[...] = _layer_norm(y + x_f32, g_ref[...], b_ref[...]).astype(o_ref.dtype)


# ----------------------------------------------------------------------------- pallas_call wrappers
def _qkv_projection(x2, p, *, tm):
    Mp, hidden = x2.shape
    resident = sum(_nbytes(p[n]) for n in ("wq_t", "wk_t", "wv_t", "bq", "bk", "bv"))
    tile = 4 * tm * hidden * 4
    sds = jax.ShapeDtypeStruct((Mp, hidden), jnp.float32)
    return pl.pallas_call(
        _qkv_kernel,
        out_shape=(sds, sds, sds),
        grid=(Mp // tm,),
        in_specs=[_row_spec(tm, hidden),
                  _const_spec(p["wq_t"].shape), _const_spec(p["wk_t"].shape),
                  _const_spec(p["wv_t"].shape),
                  _const_spec(p["bq"].shape), _const_spec(p["bk"].shape),
                  _const_spec(p["bv"].shape)],
        out_specs=(_row_spec(tm, hidden), _row_spec(tm, hidden), _row_spec(tm, hidden)),
        compiler_params=pltpu.CompilerParams(
            dimension_semantics=("parallel",),
            vmem_limit_bytes=_vmem_limit(resident, tile)),
    )(x2, p["wq_t"], p["wk_t"], p["wv_t"], p["bq"], p["bk"], p["bv"])


def _multi_head_attention(q4, k4, v4, mask4, *, scale):
    B, H, L, E = q4.shape
    S = k4.shape[2]
    per_bh = pl.BlockSpec((None, None, L, E), lambda b, h: (b, h, 0, 0))
    per_bh_s = pl.BlockSpec((None, None, L, S), lambda b, h: (b, h, 0, 0))
    kv_spec = pl.BlockSpec((None, None, S, E), lambda b, h: (b, h, 0, 0))
    return pl.pallas_call(
        functools.partial(_mha_kernel, scale=scale),
        out_shape=(jax.ShapeDtypeStruct((B, H, L, E), jnp.float32),
                   jax.ShapeDtypeStruct((B, H, L, S), jnp.float32)),
        grid=(B, H),
        in_specs=[per_bh, kv_spec, kv_spec, per_bh_s],
        out_specs=(per_bh, per_bh_s),
        compiler_params=pltpu.CompilerParams(
            dimension_semantics=("parallel", "parallel")),
    )(q4, k4, v4, mask4)


def _out_proj_add_norm(ctx2, res2, p, *, tm):
    Mp, hidden = ctx2.shape
    resident = sum(_nbytes(p[n]) for n in ("wo_t", "bo", "g1", "be1"))
    tile = 3 * tm * hidden * 4
    return pl.pallas_call(
        _proj_add_ln_kernel,
        out_shape=jax.ShapeDtypeStruct((Mp, hidden), jnp.float32),
        grid=(Mp // tm,),
        in_specs=[_row_spec(tm, hidden), _row_spec(tm, hidden),
                  _const_spec(p["wo_t"].shape), _const_spec(p["bo"].shape),
                  _const_spec(p["g1"].shape), _const_spec(p["be1"].shape)],
        out_specs=_row_spec(tm, hidden),
        compiler_params=pltpu.CompilerParams(
            dimension_semantics=("parallel",),
            vmem_limit_bytes=_vmem_limit(resident, tile)),
    )(ctx2, res2, p["wo_t"], p["bo"], p["g1"], p["be1"])


def _ffn_add_norm(x2, p, *, tm):
    Mp, hidden = x2.shape
    ffn = p["w1_t"].shape[1]
    resident = sum(_nbytes(p[n]) for n in ("w1_t", "b1", "w2_t", "b2", "g2", "be2"))
    tile = tm * (2 * hidden + ffn) * 4
    return pl.pallas_call(
        _ffn_add_ln_kernel,
        out_shape=jax.ShapeDtypeStruct((Mp, hidden), jnp.float32),
        grid=(Mp // tm,),
        in_specs=[_row_spec(tm, hidden),
                  _const_spec(p["w1_t"].shape), _const_spec(p["b1"].shape),
                  _const_spec(p["w2_t"].shape), _const_spec(p["b2"].shape),
                  _const_spec(p["g2"].shape), _const_spec(p["be2"].shape)],
        out_specs=_row_spec(tm, hidden),
        compiler_params=pltpu.CompilerParams(
            dimension_semantics=("parallel",),
            vmem_limit_bytes=_vmem_limit(resident, tile)),
    )(x2, p["w1_t"], p["b1"], p["w2_t"], p["b2"], p["g2"], p["be2"])


# ----------------------------------------------------------------------------- forward
@functools.partial(jax.jit, static_argnames=("n_heads", "tm"))
def encoder_layer1_forward(x, params, attn_mask=None, *, n_heads, tm=256):
    """x: (B, L, hidden).  Returns (out, attn) like Encoder_layer1.forward.

    tm: token-row tile. Default 256 (MXU-aligned; good on v6e/v7x, 128-256 on v5e);
    it auto-shrinks for small inputs and tokens are padded up to a tile multiple.
    Keeping Mp // tm >= 2 lets both v7x TensorCores get work (parallel axis).
    """
    B, L, hidden = x.shape
    assert hidden % n_heads == 0
    E = hidden // n_heads

    M = B * L                                    # static Python int (no device constant)
    tm_eff = min(tm, _round_up(M, 8))
    Mp = _round_up(M, tm_eff)

    x2 = x.reshape(M, hidden).astype(jnp.float32)
    if Mp != M:
        x2 = jnp.pad(x2, ((0, Mp - M), (0, 0)))  # padded rows are discarded at the end

    # 1) fused Q/K/V projections
    q, k, v = _qkv_projection(x2, params, tm=tm_eff)

    def split_heads(t):                          # (Mp, hidden) -> (B, H, L, E)
        return t[:M].reshape(B, L, n_heads, E).transpose(0, 2, 1, 3)

    q4, k4, v4 = split_heads(q), split_heads(k), split_heads(v)

    if attn_mask is None:
        # nn reference adds attn_mask to the scaled scores; treat "no mask" as zeros.
        mask4 = jnp.zeros((B, n_heads, L, L), jnp.float32)
    else:
        mask4 = jnp.broadcast_to(attn_mask.astype(jnp.float32), (B, n_heads, L, L))

    # 2) softmax attention per (batch, head); attn probs returned (output_attention=True)
    ctx4, attn = _multi_head_attention(q4, k4, v4, mask4, scale=1.0 / math.sqrt(E))

    ctx2 = ctx4.transpose(0, 2, 1, 3).reshape(M, hidden)
    if Mp != M:
        ctx2 = jnp.pad(ctx2, ((0, Mp - M), (0, 0)))

    # 3) out-projection + residual + norm1       4) FFN + residual + norm2
    y1 = _out_proj_add_norm(ctx2, x2, params, tm=tm_eff)
    out = _ffn_add_norm(y1, params, tm=tm_eff)

    return out[:M].reshape(B, L, hidden).astype(x.dtype), attn


# ----------------------------------------------------------------------------- params
def init_params(key, hidden, inter, n_heads):
    """PyTorch-layout parameters (Linear: weight (out,in), bias (out,); LN: ones/zeros)."""
    del n_heads
    ks = jax.random.split(key, 12)

    def lin(kw, kb, fan_in, fan_out):
        bound = 1.0 / math.sqrt(fan_in)
        w = jax.random.uniform(kw, (fan_out, fan_in), jnp.float32, -bound, bound)
        b = jax.random.uniform(kb, (fan_out,), jnp.float32, -bound, bound)
        return w, b

    wq, bq = lin(ks[0], ks[1], hidden, hidden)
    wk, bk = lin(ks[2], ks[3], hidden, hidden)
    wv, bv = lin(ks[4], ks[5], hidden, hidden)
    wo, bo = lin(ks[6], ks[7], hidden, hidden)
    w1, b1 = lin(ks[8], ks[9], hidden, inter)
    w2, b2 = lin(ks[10], ks[11], inter, hidden)
    return dict(wq=wq, bq=bq, wk=wk, bk=bk, wv=wv, bv=bv, wo=wo, bo=bo,
                w1=w1, b1=b1, w2=w2, b2=b2,
                g1=jnp.ones((hidden,), jnp.float32), be1=jnp.zeros((hidden,), jnp.float32),
                g2=jnp.ones((hidden,), jnp.float32), be2=jnp.zeros((hidden,), jnp.float32))


def prepare_params(raw):
    """Hoisted one-time prep: transpose weights to (in, out), cast matmul weights to bf16,
    reshape vectors to (1, d) rows for in-kernel broadcasting."""
    p = {}
    for name in ("wq", "wk", "wv", "wo", "w1", "w2"):
        p[name + "_t"] = jnp.transpose(raw[name]).astype(jnp.bfloat16)
    for name in ("bq", "bk", "bv", "bo", "b1", "b2", "g1", "be1", "g2", "be2"):
        p[name] = raw[name].reshape(1, -1).astype(jnp.float32)
    return p


# ----------------------------------------------------------------------------- reference
def _reference_forward(x, raw, n_heads, attn_mask=None):
    """Pure-JAX reference mirroring the kernel's bf16-matmul / f32-accumulate strategy."""
    B, L, hidden = x.shape
    E = hidden // n_heads

    def linear(a, w, b):                         # PyTorch layout w: (out, in)
        return jnp.dot(a.astype(jnp.bfloat16), w.T.astype(jnp.bfloat16),
                       preferred_element_type=jnp.float32) + b

    def ln(h, g, b):
        mu = jnp.mean(h, -1, keepdims=True)
        var = jnp.mean(jnp.square(h - mu), -1, keepdims=True)
        return (h - mu) * jax.lax.rsqrt(var + _LN_EPS) * g + b

    q = linear(x, raw["wq"], raw["bq"]).reshape(B, L, n_heads, E)
    k = linear(x, raw["wk"], raw["bk"]).reshape(B, L, n_heads, E)
    v = linear(x, raw["wv"], raw["bv"]).reshape(B, L, n_heads, E)
    scores = jnp.einsum('blhe,bshe->bhls', q.astype(jnp.bfloat16), k.astype(jnp.bfloat16),
                        preferred_element_type=jnp.float32)
    mask = 0.0 if attn_mask is None else attn_mask
    a = jax.nn.softmax(scores / math.sqrt(E) + mask, axis=-1)
    ctx = jnp.einsum('bhls,bshd->blhd', a.astype(jnp.bfloat16), v.astype(jnp.bfloat16),
                     preferred_element_type=jnp.float32).reshape(B, L, hidden)
    y1 = ln(x + linear(ctx, raw["wo"], raw["bo"]), raw["g1"], raw["be1"])
    h = _gelu_exact(linear(y1, raw["w1"], raw["b1"]))
    y = _gelu_exact(linear(h, raw["w2"], raw["b2"]))
    return ln(y1 + y, raw["g2"], raw["be2"]), a


# ----------------------------------------------------------------------------- main
if __name__ == "__main__":
    key = jax.random.PRNGKey(0)
    batch, seq, hidden, n_heads, inter = 2, 8, 32, 4, 64

    kx, kp = jax.random.split(key)
    x = jax.random.normal(kx, (batch, seq, hidden), jnp.float32)
    raw = init_params(kp, hidden, inter, n_heads)
    params = prepare_params(raw)                 # hoisted transposes / bf16 casts (once)

    out, attn = encoder_layer1_forward(x, params, n_heads=n_heads, tm=256)
    out, attn = jax.block_until_ready((out, attn))

    ref_out, ref_attn = _reference_forward(x, raw, n_heads)

    assert out.shape == (batch, seq, hidden)
    assert attn.shape == (batch, n_heads, seq, seq)
    assert bool(jnp.allclose(out, ref_out, atol=2e-2, rtol=2e-2))
    assert bool(jnp.allclose(attn, ref_attn, atol=2e-2, rtol=2e-2))

    print("KERNEL_OK")
</pallas_src>

<mosaic_0001>
module attributes {stable_mosaic.version = 11 : i64} {
  func.func @_qkv_kernel(%arg0: i32, %arg1: memref<16x32xf32, #tpu.memory_space<vmem>>, %arg2: memref<32x32xbf16, #tpu.memory_space<vmem>>, %arg3: memref<32x32xbf16, #tpu.memory_space<vmem>>, %arg4: memref<32x32xbf16, #tpu.memory_space<vmem>>, %arg5: memref<1x32xf32, #tpu.memory_space<vmem>>, %arg6: memref<1x32xf32, #tpu.memory_space<vmem>>, %arg7: memref<1x32xf32, #tpu.memory_space<vmem>>, %arg8: memref<16x32xf32, #tpu.memory_space<vmem>>, %arg9: memref<16x32xf32, #tpu.memory_space<vmem>>, %arg10: memref<16x32xf32, #tpu.memory_space<vmem>>) attributes {dimension_semantics = [#tpu.dimension_semantics<parallel>], iteration_bounds = array<i64: 1>, scalar_prefetch = 0 : i64, scratch_operands = 0 : i64, tpu.core_type = #tpu.core_type<tc>, window_params = [{transform_indices = @transform_0, window_bounds = array<i64: 16, 32>}, {pipeline_mode = #tpu.pipeline_mode<synchronous>, transform_indices = @transform_1, window_bounds = array<i64: 32, 32>}, {pipeline_mode = #tpu.pipeline_mode<synchronous>, transform_indices = @transform_2, window_bounds = array<i64: 32, 32>}, {pipeline_mode = #tpu.pipeline_mode<synchronous>, transform_indices = @transform_3, window_bounds = array<i64: 32, 32>}, {pipeline_mode = #tpu.pipeline_mode<synchronous>, transform_indices = @transform_4, window_bounds = array<i64: 1, 32>}, {pipeline_mode = #tpu.pipeline_mode<synchronous>, transform_indices = @transform_5, window_bounds = array<i64: 1, 32>}, {pipeline_mode = #tpu.pipeline_mode<synchronous>, transform_indices = @transform_6, window_bounds = array<i64: 1, 32>}, {transform_indices = @transform_7, window_bounds = array<i64: 16, 32>}, {transform_indices = @transform_8, window_bounds = array<i64: 16, 32>}, {transform_indices = @transform_9, window_bounds = array<i64: 16, 32>}]} {
    %c0 = arith.constant 0 : index
    %c0_0 = arith.constant 0 : index
    %0 = vector.load %arg1[%c0, %c0_0] : memref<16x32xf32, #tpu.memory_space<vmem>>, vector<16x32xf32>
    %1 = arith.truncf %0 : vector<16x32xf32> to vector<16x32xbf16>
    %c0_1 = arith.constant 0 : index
    %c0_2 = arith.constant 0 : index
    %2 = vector.load %arg2[%c0_1, %c0_2] : memref<32x32xbf16, #tpu.memory_space<vmem>>, vector<32x32xbf16>
    %cst = arith.constant dense<0.000000e+00> : vector<16x32xf32>
    %3 = tpu.matmul %1, %2, %cst {dimension_numbers = #tpu.dot_dimension_numbers<[1], [0], [0], [1], [0, 0, 1, 1], [], []>} : vector<16x32xbf16>, vector<32x32xbf16>, vector<16x32xf32> -> vector<16x32xf32>
    %c0_3 = arith.constant 0 : index
    %c0_4 = arith.constant 0 : index
    %4 = vector.load %arg5[%c0_3, %c0_4] : memref<1x32xf32, #tpu.memory_space<vmem>>, vector<1x32xf32>
    %5 = vector.broadcast %4 : vector<1x32xf32> to vector<16x32xf32>
    %6 = arith.addf %3, %5 : vector<16x32xf32>
    %c0_5 = arith.constant 0 : index
    %c0_6 = arith.constant 0 : index
    %7 = vector.load %arg3[%c0_5, %c0_6] : memref<32x32xbf16, #tpu.memory_space<vmem>>, vector<32x32xbf16>
    %cst_7 = arith.constant dense<0.000000e+00> : vector<16x32xf32>
    %8 = tpu.matmul %1, %7, %cst_7 {dimension_numbers = #tpu.dot_dimension_numbers<[1], [0], [0], [1], [0, 0, 1, 1], [], []>} : vector<16x32xbf16>, vector<32x32xbf16>, vector<16x32xf32> -> vector<16x32xf32>
    %c0_8 = arith.constant 0 : index
    %c0_9 = arith.constant 0 : index
    %9 = vector.load %arg6[%c0_8, %c0_9] : memref<1x32xf32, #tpu.memory_space<vmem>>, vector<1x32xf32>
    %10 = vector.broadcast %9 : vector<1x32xf32> to vector<16x32xf32>
    %11 = arith.addf %8, %10 : vector<16x32xf32>
    %c0_10 = arith.constant 0 : index
    %c0_11 = arith.constant 0 : index
    %12 = vector.load %arg4[%c0_10, %c0_11] : memref<32x32xbf16, #tpu.memory_space<vmem>>, vector<32x32xbf16>
    %cst_12 = arith.constant dense<0.000000e+00> : vector<16x32xf32>
    %13 = tpu.matmul %1, %12, %cst_12 {dimension_numbers = #tpu.dot_dimension_numbers<[1], [0], [0], [1], [0, 0, 1, 1], [], []>} : vector<16x32xbf16>, vector<32x32xbf16>, vector<16x32xf32> -> vector<16x32xf32>
    %c0_13 = arith.constant 0 : index
    %c0_14 = arith.constant 0 : index
    %14 = vector.load %arg7[%c0_13, %c0_14] : memref<1x32xf32, #tpu.memory_space<vmem>>, vector<1x32xf32>
    %15 = vector.broadcast %14 : vector<1x32xf32> to vector<16x32xf32>
    %16 = arith.addf %13, %15 : vector<16x32xf32>
    %c0_15 = arith.constant 0 : index
    %c0_16 = arith.constant 0 : index
    %17 = vector.load %arg8[%c0_15, %c0_16] : memref<16x32xf32, #tpu.memory_space<vmem>>, vector<16x32xf32>
    tpu.vector_store %arg8[%c0_15, %c0_16], %6 {strides = array<i32>} : memref<16x32xf32, #tpu.memory_space<vmem>>, vector<16x32xf32>,
    %c0_17 = arith.constant 0 : index
    %c0_18 = arith.constant 0 : index
    %18 = vector.load %arg9[%c0_17, %c0_18] : memref<16x32xf32, #tpu.memory_space<vmem>>, vector<16x32xf32>
    tpu.vector_store %arg9[%c0_17, %c0_18], %11 {strides = array<i32>} : memref<16x32xf32, #tpu.memory_space<vmem>>, vector<16x32xf32>,
    %c0_19 = arith.constant 0 : index
    %c0_20 = arith.constant 0 : index
    %19 = vector.load %arg10[%c0_19, %c0_20] : memref<16x32xf32, #tpu.memory_space<vmem>>, vector<16x32xf32>
    tpu.vector_store %arg10[%c0_19, %c0_20], %16 {strides = array<i32>} : memref<16x32xf32, #tpu.memory_space<vmem>>, vector<16x32xf32>,
    return
  }
  func.func @transform_0(%arg0: i32) -> (i32, i32) {
    %c0_i32 = arith.constant 0 : i32
    %c0_i32_0 = arith.constant 0 : i32
    return %arg0, %c0_i32 : i32, i32
  }
  func.func @transform_1(%arg0: i32) -> (i32, i32) {
    %c0_i32 = arith.constant 0 : i32
    %c0_i32_0 = arith.constant 0 : i32
    %c0_i32_1 = arith.constant 0 : i32
    return %c0_i32, %c0_i32_0 : i32, i32
  }
  func.func @transform_2(%arg0: i32) -> (i32, i32) {
    %c0_i32 = arith.constant 0 : i32
    %c0_i32_0 = arith.constant 0 : i32
    %c0_i32_1 = arith.constant 0 : i32
    return %c0_i32, %c0_i32_0 : i32, i32
  }
  func.func @transform_3(%arg0: i32) -> (i32, i32) {
    %c0_i32 = arith.constant 0 : i32
    %c0_i32_0 = arith.constant 0 : i32
    %c0_i32_1 = arith.constant 0 : i32
    return %c0_i32, %c0_i32_0 : i32, i32
  }
  func.func @transform_4(%arg0: i32) -> (i32, i32) {
    %c0_i32 = arith.constant 0 : i32
    %c0_i32_0 = arith.constant 0 : i32
    %c0_i32_1 = arith.constant 0 : i32
    return %c0_i32, %c0_i32_0 : i32, i32
  }
  func.func @transform_5(%arg0: i32) -> (i32, i32) {
    %c0_i32 = arith.constant 0 : i32
    %c0_i32_0 = arith.constant 0 : i32
    %c0_i32_1 = arith.constant 0 : i32
    return %c0_i32, %c0_i32_0 : i32, i32
  }
  func.func @transform_6(%arg0: i32) -> (i32, i32) {
    %c0_i32 = arith.constant 0 : i32
    %c0_i32_0 = arith.constant 0 : i32
    %c0_i32_1 = arith.constant 0 : i32
    return %c0_i32, %c0_i32_0 : i32, i32
  }
  func.func @transform_7(%arg0: i32) -> (i32, i32) {
    %c0_i32 = arith.constant 0 : i32
    %c0_i32_0 = arith.constant 0 : i32
    return %arg0, %c0_i32 : i32, i32
  }
  func.func @transform_8(%arg0: i32) -> (i32, i32) {
    %c0_i32 = arith.constant 0 : i32
    %c0_i32_0 = arith.constant 0 : i32
    return %arg0, %c0_i32 : i32, i32
  }
  func.func @transform_9(%arg0: i32) -> (i32, i32) {
    %c0_i32 = arith.constant 0 : i32
    %c0_i32_0 = arith.constant 0 : i32
    return %arg0, %c0_i32 : i32, i32
  }
}

module attributes {stable_mosaic.version = 11 : i64} {
  func.func @_mha_kernel(%arg0: i32, %arg1: i32, %arg2: memref<1x1x8x8xf32, #tpu.memory_space<vmem>>, %arg3: memref<1x1x8x8xf32, #tpu.memory_space<vmem>>, %arg4: memref<1x1x8x8xf32, #tpu.memory_space<vmem>>, %arg5: memref<1x1x8x8xf32, #tpu.memory_space<vmem>>, %arg6: memref<1x1x8x8xf32, #tpu.memory_space<vmem>>, %arg7: memref<1x1x8x8xf32, #tpu.memory_space<vmem>>) attributes {dimension_semantics = [#tpu.dimension_semantics<parallel>, #tpu.dimension_semantics<parallel>], iteration_bounds = array<i64: 2, 4>, scalar_prefetch = 0 : i64, scratch_operands = 0 : i64, tpu.core_type = #tpu.core_type<tc>, window_params = [{transform_indices = @transform_0, window_bounds = array<i64: 1, 1, 8, 8>}, {transform_indices = @transform_1, window_bounds = array<i64: 1, 1, 8, 8>}, {transform_indices = @transform_2, window_bounds = array<i64: 1, 1, 8, 8>}, {transform_indices = @transform_3, window_bounds = array<i64: 1, 1, 8, 8>}, {transform_indices = @transform_4, window_bounds = array<i64: 1, 1, 8, 8>}, {transform_indices = @transform_5, window_bounds = array<i64: 1, 1, 8, 8>}]} {
    %c0 = arith.constant 0 : index
    %c0_0 = arith.constant 0 : index
    %c0_1 = arith.constant 0 : index
    %c0_2 = arith.constant 0 : index
    %0 = vector.load %arg2[%c0, %c0_0, %c0_1, %c0_2] : memref<1x1x8x8xf32, #tpu.memory_space<vmem>>, vector<1x1x8x8xf32>
    %1 = vector.shape_cast %0 : vector<1x1x8x8xf32> to vector<8x8xf32>
    %2 = arith.truncf %1 : vector<8x8xf32> to vector<8x8xbf16>
    %c0_3 = arith.constant 0 : index
    %c0_4 = arith.constant 0 : index
    %c0_5 = arith.constant 0 : index
    %c0_6 = arith.constant 0 : index
    %3 = vector.load %arg3[%c0_3, %c0_4, %c0_5, %c0_6] : memref<1x1x8x8xf32, #tpu.memory_space<vmem>>, vector<1x1x8x8xf32>
    %4 = vector.shape_cast %3 : vector<1x1x8x8xf32> to vector<8x8xf32>
    %5 = arith.truncf %4 : vector<8x8xf32> to vector<8x8xbf16>
    %c0_7 = arith.constant 0 : index
    %c0_8 = arith.constant 0 : index
    %c0_9 = arith.constant 0 : index
    %c0_10 = arith.constant 0 : index
    %6 = vector.load %arg4[%c0_7, %c0_8, %c0_9, %c0_10] : memref<1x1x8x8xf32, #tpu.memory_space<vmem>>, vector<1x1x8x8xf32>
    %7 = vector.shape_cast %6 : vector<1x1x8x8xf32> to vector<8x8xf32>
    %8 = arith.truncf %7 : vector<8x8xf32> to vector<8x8xbf16>
    %cst = arith.constant dense<0.000000e+00> : vector<8x8xf32>
    %9 = tpu.matmul %2, %5, %cst {dimension_numbers = #tpu.dot_dimension_numbers<[1], [1], [0], [0], [0, 0, 1, 0], [], []>} : vector<8x8xbf16>, vector<8x8xbf16>, vector<8x8xf32> -> vector<8x8xf32>
    %cst_11 = arith.constant 0.353553385 : f32
    %10 = vector.broadcast %cst_11 : f32 to vector<8x8xf32>
    %11 = arith.mulf %9, %10 : vector<8x8xf32>
    %c0_12 = arith.constant 0 : index
    %c0_13 = arith.constant 0 : index
    %c0_14 = arith.constant 0 : index
    %c0_15 = arith.constant 0 : index
    %12 = vector.load %arg5[%c0_12, %c0_13, %c0_14, %c0_15] : memref<1x1x8x8xf32, #tpu.memory_space<vmem>>, vector<1x1x8x8xf32>
    %13 = vector.shape_cast %12 : vector<1x1x8x8xf32> to vector<8x8xf32>
    %14 = arith.addf %11, %13 : vector<8x8xf32>
    %cst_16 = arith.constant dense<0xFF800000> : vector<8xf32>
    %15 = vector.multi_reduction <maximumf>, %14, %cst_16 [1] : vector<8x8xf32> to vector<8xf32>
    %16 = vector.shape_cast %15 : vector<8xf32> to vector<8x1xf32>
    %17 = vector.broadcast %16 : vector<8x1xf32> to vector<8x8xf32>
    %18 = arith.subf %14, %17 : vector<8x8xf32>
    %19 = math.exp %18 : vector<8x8xf32>
    %cst_17 = arith.constant dense<0.000000e+00> : vector<8xf32>
    %20 = vector.multi_reduction <add>, %19, %cst_17 [1] : vector<8x8xf32> to vector<8xf32>
    %21 = vector.shape_cast %20 : vector<8xf32> to vector<8x1xf32>
    %22 = vector.broadcast %21 : vector<8x1xf32> to vector<8x8xf32>
    %23 = arith.divf %19, %22 : vector<8x8xf32>
    %c0_18 = arith.constant 0 : index
    %c0_19 = arith.constant 0 : index
    %c0_20 = arith.constant 0 : index
    %c0_21 = arith.constant 0 : index
    %24 = vector.load %arg7[%c0_18, %c0_19, %c0_20, %c0_21] : memref<1x1x8x8xf32, #tpu.memory_space<vmem>>, vector<1x1x8x8xf32>
    %25 = vector.shape_cast %24 : vector<1x1x8x8xf32> to vector<8x8xf32>
    %26 = vector.shape_cast %23 : vector<8x8xf32> to vector<1x1x8x8xf32>
    tpu.vector_store %arg7[%c0_18, %c0_19, %c0_20, %c0_21], %26 {strides = array<i32>} : memref<1x1x8x8xf32, #tpu.memory_space<vmem>>, vector<1x1x8x8xf32>,
    %27 = arith.truncf %23 : vector<8x8xf32> to vector<8x8xbf16>
    %cst_22 = arith.constant dense<0.000000e+00> : vector<8x8xf32>
    %28 = tpu.matmul %27, %8, %cst_22 {dimension_numbers = #tpu.dot_dimension_numbers<[1], [0], [0], [1], [0, 0, 1, 1], [], []>} : vector<8x8xbf16>, vector<8x8xbf16>, vector<8x8xf32> -> vector<8x8xf32>
    %c0_23 = arith.constant 0 : index
    %c0_24 = arith.constant 0 : index
    %c0_25 = arith.constant 0 : index
    %c0_26 = arith.constant 0 : index
    %29 = vector.load %arg6[%c0_23, %c0_24, %c0_25, %c0_26] : memref<1x1x8x8xf32, #tpu.memory_space<vmem>>, vector<1x1x8x8xf32>
    %30 = vector.shape_cast %29 : vector<1x1x8x8xf32> to vector<8x8xf32>
    %31 = vector.shape_cast %28 : vector<8x8xf32> to vector<1x1x8x8xf32>
    tpu.vector_store %arg6[%c0_23, %c0_24, %c0_25, %c0_26], %31 {strides = array<i32>} : memref<1x1x8x8xf32, #tpu.memory_space<vmem>>, vector<1x1x8x8xf32>,
    return
  }
  func.func @transform_0(%arg0: i32, %arg1: i32) -> (i32, i32, i32, i32) {
    %c0_i32 = arith.constant 0 : i32
    %c0_i32_0 = arith.constant 0 : i32
    %c0_i32_1 = arith.constant 0 : i32
    return %arg0, %arg1, %c0_i32, %c0_i32_0 : i32, i32, i32, i32
  }
  func.func @transform_1(%arg0: i32, %arg1: i32) -> (i32, i32, i32, i32) {
    %c0_i32 = arith.constant 0 : i32
    %c0_i32_0 = arith.constant 0 : i32
    %c0_i32_1 = arith.constant 0 : i32
    return %arg0, %arg1, %c0_i32, %c0_i32_0 : i32, i32, i32, i32
  }
  func.func @transform_2(%arg0: i32, %arg1: i32) -> (i32, i32, i32, i32) {
    %c0_i32 = arith.constant 0 : i32
    %c0_i32_0 = arith.constant 0 : i32
    %c0_i32_1 = arith.constant 0 : i32
    return %arg0, %arg1, %c0_i32, %c0_i32_0 : i32, i32, i32, i32
  }
  func.func @transform_3(%arg0: i32, %arg1: i32) -> (i32, i32, i32, i32) {
    %c0_i32 = arith.constant 0 : i32
    %c0_i32_0 = arith.constant 0 : i32
    %c0_i32_1 = arith.constant 0 : i32
    return %arg0, %arg1, %c0_i32, %c0_i32_0 : i32, i32, i32, i32
  }
  func.func @transform_4(%arg0: i32, %arg1: i32) -> (i32, i32, i32, i32) {
    %c0_i32 = arith.constant 0 : i32
    %c0_i32_0 = arith.constant 0 : i32
    %c0_i32_1 = arith.constant 0 : i32
    return %arg0, %arg1, %c0_i32, %c0_i32_0 : i32, i32, i32, i32
  }
  func.func @transform_5(%arg0: i32, %arg1: i32) -> (i32, i32, i32, i32) {
    %c0_i32 = arith.constant 0 : i32
    %c0_i32_0 = arith.constant 0 : i32
    %c0_i32_1 = arith.constant 0 : i32
    return %arg0, %arg1, %c0_i32, %c0_i32_0 : i32, i32, i32, i32
  }
}

module attributes {stable_mosaic.version = 11 : i64} {
  func.func @_proj_add_ln_kernel(%arg0: i32, %arg1: memref<16x32xf32, #tpu.memory_space<vmem>>, %arg2: memref<16x32xf32, #tpu.memory_space<vmem>>, %arg3: memref<32x32xbf16, #tpu.memory_space<vmem>>, %arg4: memref<1x32xf32, #tpu.memory_space<vmem>>, %arg5: memref<1x32xf32, #tpu.memory_space<vmem>>, %arg6: memref<1x32xf32, #tpu.memory_space<vmem>>, %arg7: memref<16x32xf32, #tpu.memory_space<vmem>>) attributes {dimension_semantics = [#tpu.dimension_semantics<parallel>], iteration_bounds = array<i64: 1>, scalar_prefetch = 0 : i64, scratch_operands = 0 : i64, tpu.core_type = #tpu.core_type<tc>, window_params = [{transform_indices = @transform_0, window_bounds = array<i64: 16, 32>}, {transform_indices = @transform_1, window_bounds = array<i64: 16, 32>}, {pipeline_mode = #tpu.pipeline_mode<synchronous>, transform_indices = @transform_2, window_bounds = array<i64: 32, 32>}, {pipeline_mode = #tpu.pipeline_mode<synchronous>, transform_indices = @transform_3, window_bounds = array<i64: 1, 32>}, {pipeline_mode = #tpu.pipeline_mode<synchronous>, transform_indices = @transform_4, window_bounds = array<i64: 1, 32>}, {pipeline_mode = #tpu.pipeline_mode<synchronous>, transform_indices = @transform_5, window_bounds = array<i64: 1, 32>}, {transform_indices = @transform_6, window_bounds = array<i64: 16, 32>}]} {
    %c0 = arith.constant 0 : index
    %c0_0 = arith.constant 0 : index
    %0 = vector.load %arg1[%c0, %c0_0] : memref<16x32xf32, #tpu.memory_space<vmem>>, vector<16x32xf32>
    %1 = arith.truncf %0 : vector<16x32xf32> to vector<16x32xbf16>
    %c0_1 = arith.constant 0 : index
    %c0_2 = arith.constant 0 : index
    %2 = vector.load %arg3[%c0_1, %c0_2] : memref<32x32xbf16, #tpu.memory_space<vmem>>, vector<32x32xbf16>
    %cst = arith.constant dense<0.000000e+00> : vector<16x32xf32>
    %3 = tpu.matmul %1, %2, %cst {dimension_numbers = #tpu.dot_dimension_numbers<[1], [0], [0], [1], [0, 0, 1, 1], [], []>} : vector<16x32xbf16>, vector<32x32xbf16>, vector<16x32xf32> -> vector<16x32xf32>
    %c0_3 = arith.constant 0 : index
    %c0_4 = arith.constant 0 : index
    %4 = vector.load %arg4[%c0_3, %c0_4] : memref<1x32xf32, #tpu.memory_space<vmem>>, vector<1x32xf32>
    %5 = vector.broadcast %4 : vector<1x32xf32> to vector<16x32xf32>
    %6 = arith.addf %3, %5 : vector<16x32xf32>
    %c0_5 = arith.constant 0 : index
    %c0_6 = arith.constant 0 : index
    %7 = vector.load %arg2[%c0_5, %c0_6] : memref<16x32xf32, #tpu.memory_space<vmem>>, vector<16x32xf32>
    %8 = arith.addf %6, %7 : vector<16x32xf32>
    %c0_7 = arith.constant 0 : index
    %c0_8 = arith.constant 0 : index
    %9 = vector.load %arg5[%c0_7, %c0_8] : memref<1x32xf32, #tpu.memory_space<vmem>>, vector<1x32xf32>
    %c0_9 = arith.constant 0 : index
    %c0_10 = arith.constant 0 : index
    %10 = vector.load %arg6[%c0_9, %c0_10] : memref<1x32xf32, #tpu.memory_space<vmem>>, vector<1x32xf32>
    %cst_11 = arith.constant dense<0.000000e+00> : vector<16xf32>
    %11 = vector.multi_reduction <add>, %8, %cst_11 [1] : vector<16x32xf32> to vector<16xf32>
    %12 = vector.shape_cast %11 : vector<16xf32> to vector<16x1xf32>
    %cst_12 = arith.constant 3.200000e+01 : f32
    %13 = vector.broadcast %cst_12 : f32 to vector<16x1xf32>
    %14 = arith.divf %12, %13 : vector<16x1xf32>
    %15 = vector.broadcast %14 : vector<16x1xf32> to vector<16x32xf32>
    %16 = arith.subf %8, %15 : vector<16x32xf32>
    %17 = arith.mulf %16, %16 : vector<16x32xf32>
    %cst_13 = arith.constant dense<0.000000e+00> : vector<16xf32>
    %18 = vector.multi_reduction <add>, %17, %cst_13 [1] : vector<16x32xf32> to vector<16xf32>
    %19 = vector.shape_cast %18 : vector<16xf32> to vector<16x1xf32>
    %cst_14 = arith.constant 3.200000e+01 : f32
    %20 = vector.broadcast %cst_14 : f32 to vector<16x1xf32>
    %21 = arith.divf %19, %20 : vector<16x1xf32>
    %22 = vector.broadcast %14 : vector<16x1xf32> to vector<16x32xf32>
    %23 = arith.subf %8, %22 : vector<16x32xf32>
    %cst_15 = arith.constant 9.99999974E-6 : f32
    %24 = vector.broadcast %cst_15 : f32 to vector<16x1xf32>
    %25 = arith.addf %21, %24 : vector<16x1xf32>
    %26 = math.rsqrt %25 : vector<16x1xf32>
    %27 = vector.broadcast %26 : vector<16x1xf32> to vector<16x32xf32>
    %28 = arith.mulf %23, %27 : vector<16x32xf32>
    %29 = vector.broadcast %9 : vector<1x32xf32> to vector<16x32xf32>
    %30 = arith.mulf %28, %29 : vector<16x32xf32>
    %31 = vector.broadcast %10 : vector<1x32xf32> to vector<16x32xf32>
    %32 = arith.addf %30, %31 : vector<16x32xf32>
    %c0_16 = arith.constant 0 : index
    %c0_17 = arith.constant 0 : index
    %33 = vector.load %arg7[%c0_16, %c0_17] : memref<16x32xf32, #tpu.memory_space<vmem>>, vector<16x32xf32>
    tpu.vector_store %arg7[%c0_16, %c0_17], %32 {strides = array<i32>} : memref<16x32xf32, #tpu.memory_space<vmem>>, vector<16x32xf32>,
    return
  }
  func.func @transform_0(%arg0: i32) -> (i32, i32) {
    %c0_i32 = arith.constant 0 : i32
    %c0_i32_0 = arith.constant 0 : i32
    return %arg0, %c0_i32 : i32, i32
  }
  func.func @transform_1(%arg0: i32) -> (i32, i32) {
    %c0_i32 = arith.constant 0 : i32
    %c0_i32_0 = arith.constant 0 : i32
    return %arg0, %c0_i32 : i32, i32
  }
  func.func @transform_2(%arg0: i32) -> (i32, i32) {
    %c0_i32 = arith.constant 0 : i32
    %c0_i32_0 = arith.constant 0 : i32
    %c0_i32_1 = arith.constant 0 : i32
    return %c0_i32, %c0_i32_0 : i32, i32
  }
  func.func @transform_3(%arg0: i32) -> (i32, i32) {
    %c0_i32 = arith.constant 0 : i32
    %c0_i32_0 = arith.constant 0 : i32
    %c0_i32_1 = arith.constant 0 : i32
    return %c0_i32, %c0_i32_0 : i32, i32
  }
  func.func @transform_4(%arg0: i32) -> (i32, i32) {
    %c0_i32 = arith.constant 0 : i32
    %c0_i32_0 = arith.constant 0 : i32
    %c0_i32_1 = arith.constant 0 : i32
    return %c0_i32, %c0_i32_0 : i32, i32
  }
  func.func @transform_5(%arg0: i32) -> (i32, i32) {
    %c0_i32 = arith.constant 0 : i32
    %c0_i32_0 = arith.constant 0 : i32
    %c0_i32_1 = arith.constant 0 : i32
    return %c0_i32, %c0_i32_0 : i32, i32
  }
  func.func @transform_6(%arg0: i32) -> (i32, i32) {
    %c0_i32 = arith.constant 0 : i32
    %c0_i32_0 = arith.constant 0 : i32
    return %arg0, %c0_i32 : i32, i32
  }
}

module attributes {stable_mosaic.version = 11 : i64} {
  func.func @_ffn_add_ln_kernel(%arg0: i32, %arg1: memref<16x32xf32, #tpu.memory_space<vmem>>, %arg2: memref<32x64xbf16, #tpu.memory_space<vmem>>, %arg3: memref<1x64xf32, #tpu.memory_space<vmem>>, %arg4: memref<64x32xbf16, #tpu.memory_space<vmem>>, %arg5: memref<1x32xf32, #tpu.memory_space<vmem>>, %arg6: memref<1x32xf32, #tpu.memory_space<vmem>>, %arg7: memref<1x32xf32, #tpu.memory_space<vmem>>, %arg8: memref<16x32xf32, #tpu.memory_space<vmem>>) attributes {dimension_semantics = [#tpu.dimension_semantics<parallel>], iteration_bounds = array<i64: 1>, scalar_prefetch = 0 : i64, scratch_operands = 0 : i64, tpu.core_type = #tpu.core_type<tc>, window_params = [{transform_indices = @transform_0, window_bounds = array<i64: 16, 32>}, {pipeline_mode = #tpu.pipeline_mode<synchronous>, transform_indices = @transform_1, window_bounds = array<i64: 32, 64>}, {pipeline_mode = #tpu.pipeline_mode<synchronous>, transform_indices = @transform_2, window_bounds = array<i64: 1, 64>}, {pipeline_mode = #tpu.pipeline_mode<synchronous>, transform_indices = @transform_3, window_bounds = array<i64: 64, 32>}, {pipeline_mode = #tpu.pipeline_mode<synchronous>, transform_indices = @transform_4, window_bounds = array<i64: 1, 32>}, {pipeline_mode = #tpu.pipeline_mode<synchronous>, transform_indices = @transform_5, window_bounds = array<i64: 1, 32>}, {pipeline_mode = #tpu.pipeline_mode<synchronous>, transform_indices = @transform_6, window_bounds = array<i64: 1, 32>}, {transform_indices = @transform_7, window_bounds = array<i64: 16, 32>}]} {
    %c0 = arith.constant 0 : index
    %c0_0 = arith.constant 0 : index
    %0 = vector.load %arg1[%c0, %c0_0] : memref<16x32xf32, #tpu.memory_space<vmem>>, vector<16x32xf32>
    %1 = arith.truncf %0 : vector<16x32xf32> to vector<16x32xbf16>
    %c0_1 = arith.constant 0 : index
    %c0_2 = arith.constant 0 : index
    %2 = vector.load %arg2[%c0_1, %c0_2] : memref<32x64xbf16, #tpu.memory_space<vmem>>, vector<32x64xbf16>
    %cst = arith.constant dense<0.000000e+00> : vector<16x64xf32>
    %3 = tpu.matmul %1, %2, %cst {dimension_numbers = #tpu.dot_dimension_numbers<[1], [0], [0], [1], [0, 0, 1, 1], [], []>} : vector<16x32xbf16>, vector<32x64xbf16>, vector<16x64xf32> -> vector<16x64xf32>
    %c0_3 = arith.constant 0 : index
    %c0_4 = arith.constant 0 : index
    %4 = vector.load %arg3[%c0_3, %c0_4] : memref<1x64xf32, #tpu.memory_space<vmem>>, vector<1x64xf32>
    %5 = vector.broadcast %4 : vector<1x64xf32> to vector<16x64xf32>
    %6 = arith.addf %3, %5 : vector<16x64xf32>
    %cst_5 = arith.constant 5.000000e-01 : f32
    %7 = vector.broadcast %cst_5 : f32 to vector<16x64xf32>
    %8 = arith.mulf %7, %6 : vector<16x64xf32>
    %cst_6 = arith.constant 0.707106769 : f32
    %9 = vector.broadcast %cst_6 : f32 to vector<16x64xf32>
    %10 = arith.mulf %6, %9 : vector<16x64xf32>
    %11 = math.erf %10 : vector<16x64xf32>
    %cst_7 = arith.constant 1.000000e+00 : f32
    %12 = vector.broadcast %cst_7 : f32 to vector<16x64xf32>
    %13 = arith.addf %12, %11 : vector<16x64xf32>
    %14 = arith.mulf %8, %13 : vector<16x64xf32>
    %15 = arith.truncf %14 : vector<16x64xf32> to vector<16x64xbf16>
    %c0_8 = arith.constant 0 : index
    %c0_9 = arith.constant 0 : index
    %16 = vector.load %arg4[%c0_8, %c0_9] : memref<64x32xbf16, #tpu.memory_space<vmem>>, vector<64x32xbf16>
    %cst_10 = arith.constant dense<0.000000e+00> : vector<16x32xf32>
    %17 = tpu.matmul %15, %16, %cst_10 {dimension_numbers = #tpu.dot_dimension_numbers<[1], [0], [0], [1], [0, 0, 1, 1], [], []>} : vector<16x64xbf16>, vector<64x32xbf16>, vector<16x32xf32> -> vector<16x32xf32>
    %c0_11 = arith.constant 0 : index
    %c0_12 = arith.constant 0 : index
    %18 = vector.load %arg5[%c0_11, %c0_12] : memref<1x32xf32, #tpu.memory_space<vmem>>, vector<1x32xf32>
    %19 = vector.broadcast %18 : vector<1x32xf32> to vector<16x32xf32>
    %20 = arith.addf %17, %19 : vector<16x32xf32>
    %cst_13 = arith.constant 5.000000e-01 : f32
    %21 = vector.broadcast %cst_13 : f32 to vector<16x32xf32>
    %22 = arith.mulf %21, %20 : vector<16x32xf32>
    %cst_14 = arith.constant 0.707106769 : f32
    %23 = vector.broadcast %cst_14 : f32 to vector<16x32xf32>
    %24 = arith.mulf %20, %23 : vector<16x32xf32>
    %25 = math.erf %24 : vector<16x32xf32>
    %cst_15 = arith.constant 1.000000e+00 : f32
    %26 = vector.broadcast %cst_15 : f32 to vector<16x32xf32>
    %27 = arith.addf %26, %25 : vector<16x32xf32>
    %28 = arith.mulf %22, %27 : vector<16x32xf32>
    %29 = arith.addf %28, %0 : vector<16x32xf32>
    %c0_16 = arith.constant 0 : index
    %c0_17 = arith.constant 0 : index
    %30 = vector.load %arg6[%c0_16, %c0_17] : memref<1x32xf32, #tpu.memory_space<vmem>>, vector<1x32xf32>
    %c0_18 = arith.constant 0 : index
    %c0_19 = arith.constant 0 : index
    %31 = vector.load %arg7[%c0_18, %c0_19] : memref<1x32xf32, #tpu.memory_space<vmem>>, vector<1x32xf32>
    %cst_20 = arith.constant dense<0.000000e+00> : vector<16xf32>
    %32 = vector.multi_reduction <add>, %29, %cst_20 [1] : vector<16x32xf32> to vector<16xf32>
    %33 = vector.shape_cast %32 : vector<16xf32> to vector<16x1xf32>
    %cst_21 = arith.constant 3.200000e+01 : f32
    %34 = vector.broadcast %cst_21 : f32 to vector<16x1xf32>
    %35 = arith.divf %33, %34 : vector<16x1xf32>
    %36 = vector.broadcast %35 : vector<16x1xf32> to vector<16x32xf32>
    %37 = arith.subf %29, %36 : vector<16x32xf32>
    %38 = arith.mulf %37, %37 : vector<16x32xf32>
    %cst_22 = arith.constant dense<0.000000e+00> : vector<16xf32>
    %39 = vector.multi_reduction <add>, %38, %cst_22 [1] : vector<16x32xf32> to vector<16xf32>
    %40 = vector.shape_cast %39 : vector<16xf32> to vector<16x1xf32>
    %cst_23 = arith.constant 3.200000e+01 : f32
    %41 = vector.broadcast %cst_23 : f32 to vector<16x1xf32>
    %42 = arith.divf %40, %41 : vector<16x1xf32>
    %43 = vector.broadcast %35 : vector<16x1xf32> to vector<16x32xf32>
    %44 = arith.subf %29, %43 : vector<16x32xf32>
    %cst_24 = arith.constant 9.99999974E-6 : f32
    %45 = vector.broadcast %cst_24 : f32 to vector<16x1xf32>
    %46 = arith.addf %42, %45 : vector<16x1xf32>
    %47 = math.rsqrt %46 : vector<16x1xf32>
    %48 = vector.broadcast %47 : vector<16x1xf32> to vector<16x32xf32>
    %49 = arith.mulf %44, %48 : vector<16x32xf32>
    %50 = vector.broadcast %30 : vector<1x32xf32> to vector<16x32xf32>
    %51 = arith.mulf %49, %50 : vector<16x32xf32>
    %52 = vector.broadcast %31 : vector<1x32xf32> to vector<16x32xf32>
    %53 = arith.addf %51, %52 : vector<16x32xf32>
    %c0_25 = arith.constant 0 : index
    %c0_26 = arith.constant 0 : index
    %54 = vector.load %arg8[%c0_25, %c0_26] : memref<16x32xf32, #tpu.memory_space<vmem>>, vector<16x32xf32>
    tpu.vector_store %arg8[%c0_25, %c0_26], %53 {strides = array<i32>} : memref<16x32xf32, #tpu.memory_space<vmem>>, vector<16x32xf32>,
    return
  }
  func.func @transform_0(%arg0: i32) -> (i32, i32) {
    %c0_i32 = arith.constant 0 : i32
    %c0_i32_0 = arith.constant 0 : i32
    return %arg0, %c0_i32 : i32, i32
  }
  func.func @transform_1(%arg0: i32) -> (i32, i32) {
    %c0_i32 = arith.constant 0 : i32
    %c0_i32_0 = arith.constant 0 : i32
    %c0_i32_1 = arith.constant 0 : i32
    return %c0_i32, %c0_i32_0 : i32, i32
  }
  func.func @transform_2(%arg0: i32) -> (i32, i32) {
    %c0_i32 = arith.constant 0 : i32
    %c0_i32_0 = arith.constant 0 : i32
    %c0_i32_1 = arith.constant 0 : i32
    return %c0_i32, %c0_i32_0 : i32, i32
  }
  func.func @transform_3(%arg0: i32) -> (i32, i32) {
    %c0_i32 = arith.constant 0 : i32
    %c0_i32_0 = arith.constant 0 : i32
    %c0_i32_1 = arith.constant 0 : i32
    return %c0_i32, %c0_i32_0 : i32, i32
  }
  func.func @transform_4(%arg0: i32) -> (i32, i32) {
    %c0_i32 = arith.constant 0 : i32
    %c0_i32_0 = arith.constant 0 : i32
    %c0_i32_1 = arith.constant 0 : i32
    return %c0_i32, %c0_i32_0 : i32, i32
  }
  func.func @transform_5(%arg0: i32) -> (i32, i32) {
    %c0_i32 = arith.constant 0 : i32
    %c0_i32_0 = arith.constant 0 : i32
    %c0_i32_1 = arith.constant 0 : i32
    return %c0_i32, %c0_i32_0 : i32, i32
  }
  func.func @transform_6(%arg0: i32) -> (i32, i32) {
    %c0_i32 = arith.constant 0 : i32
    %c0_i32_0 = arith.constant 0 : i32
    %c0_i32_1 = arith.constant 0 : i32
    return %c0_i32, %c0_i32_0 : i32, i32
  }
  func.func @transform_7(%arg0: i32) -> (i32, i32) {
    %c0_i32 = arith.constant 0 : i32
    %c0_i32_0 = arith.constant 0 : i32
    return %arg0, %c0_i32 : i32, i32
  }
}

</mosaic_0001>

<bundles_post_ra>
// kernel: encoder_layer1_forward.6
= control target key start
LH: loop header
LB: loop body
LE: loop exit
PB: predicated region body
PF: predicated region fallthrough
CT: control target
= control target key end

     0   :  { %v175_v0 = vmov 0.0   ;;  %vm176_vm0 = vmmov 0   ;;  %vm50_vm1 = vcmask 261120   ;;  %s252_s2 = inlined_call_operand.vmem [shape: bf16[32,32], index: 2, kind: input, shape index: {}]   ;;  %s253_s0 = inlined_call_operand.vmem [shape: f32[16,32], index: 0, kind: input, shape index: {}]   ;;  %s254_s3 = inlined_call_operand.vmem [shape: f32[1,32], index: 3, kind: input, shape index: {}]   ;;  %s255_s1 = inlined_call_operand.vmem [shape: f32[16,32], index: 1, kind: input, shape index: {}]   ;;  %s256_s4 = inlined_call_operand.vmem [shape: f32[1,32], index: 4, kind: input, shape index: {}]   ;;  %s257_s5 = inlined_call_operand.vmem [shape: f32[1,32], index: 5, kind: input, shape index: {}]   ;;  %s258_s6 = inlined_call_operand.vmem [shape: f32[16,32], index: 6, kind: output, shape index: {}]  }
   0x1   :  { %159 = vmatprep.subr.bf16.mxu0 %v175_v0  ;;  %v169_v1 = vld [vmem:[%s252_s2 + $0x8] sm:$0xff]   ;;  %163 = vmatprep.mubr.msk.bf16.mxu0 %vm176_vm0, %v175_v0  ;;  %v170_v2 = vld [vmem:[%s252_s2] sm:$0xff]  }
   0x2   :  { %160 = vmatpush3.bf16.msra.mxu0 %v169_v1  ;;  %v24_v3 = vld [vmem:[%s253_s0] sm:$0xff]  ;;  %v25_v4 = vld [vmem:[%s253_s0 + $0x8] sm:$0xff] }
   0x3   :  { %161 = vmatprep.subr.bf16.mxu0 %v175_v0  ;;  %v26_v5 = vpack.c.bf16 %v25_v4, %v24_v3  ;;  %v150_v6 = vld [vmem:[%s254_s3] ss:$0 sm:$0xff]  ;;  %v96_v13 = vld [vmem:[%s255_s1 + $0x8] sm:$0xff] }
   0x4   :  { %v95_v8 = vld [vmem:[%s255_s1] sm:$0xff] }
   0x5   :  { %v154_v36 = vld [vmem:[%s256_s4] ss:$0 sm:$0xff] }
   0x6   :  { %162 = vmatpush3.bf16.msra.mxu0 %v170_v2  ;;  %v155_v38 = vld [vmem:[%s257_s5] ss:$0 sm:$0xff] }
   0x9   :  { %164 = vmatmul.mubr.msk.bf16.vlgmr.msra.gmra.mxu0 %vm50_vm1, %v26_v5 }
  0xc9   :  { %v88_v7 = vpop.f32.mrf.mxu0 }
  0xca   :  { %v89_v9 = vadd.f32 %v150_v6, %v88_v7 }
  0xcb   :  { %v165_v10 = vpop.f32.mrf.mxu0 }
  0xcc   :  { %v97_v11 = vadd.f32 %v95_v8, %v89_v9 }
  0xcd   :  { %v91_v12 = vpop.f32.mrf.mxu0 }
  0xce   :  { %v92_v14 = vadd.f32 %v150_v6, %v91_v12  ;;  %v101_v15 = vsel %vm50_vm1, %v97_v11, 0.0 }
  0xcf   :  { %102 = vadd.xlane.f32.xlu0 %v101_v15  ;;  %v166_v16 = vpop.f32.mrf.mxu0 }
  0xd0   :  { %v98_v17 = vadd.f32 %v96_v13, %v92_v14 }
  0xd2   :  { %v104_v18 = vsel %vm50_vm1, %v98_v17, 0.0 }
  0xd3   :  { %105 = vadd.xlane.f32.xlu0 %v104_v18 }
 0x158   :  { %v103_v19 = vpop.xlane.xlu0 %102 }
 0x159   :  { %v108_v20 = vmul.f32 0.03125, %v103_v19 }
 0x15b   :  { %v110_v21 = vsub.f32 %v97_v11, %v108_v20 }
 0x15c   :  { %v106_v22 = vpop.xlane.xlu0 %105 }
 0x15d   :  { %v109_v23 = vmul.f32 0.03125, %v106_v22  ;;  %v112_v24 = vmul.f32 %v110_v21, %v110_v21 }
 0x15f   :  { %v111_v25 = vsub.f32 %v98_v17, %v109_v23  ;;  %v114_v26 = vsel %vm50_vm1, %v112_v24, 0.0 }
 0x160   :  { %115 = vadd.xlane.f32.xlu1 %v114_v26 }
 0x161   :  { %v113_v27 = vmul.f32 %v111_v25, %v111_v25 }
 0x163   :  { %v117_v28 = vsel %vm50_vm1, %v113_v27, 0.0 }
 0x164   :  { %118 = vadd.xlane.f32.xlu1 %v117_v28 }
 0x1e9   :  { %v116_v29 = vpop.xlane.xlu1 %115 }
 0x1ea   :  { %v120_v30 = vmul.f32 0.03125, %v116_v29 }
 0x1ec   :  { %v122_v31 = vadd.f32 1e-05, %v120_v30 }
 0x1ed   :  { %v119_v32 = vpop.xlane.xlu1 %118 }
 0x1ee   :  { %171 = vrsqrt.f32 %v122_v31  ;;  %v121_v33 = vmul.f32 0.03125, %v119_v32 }
 0x1f0   :  { %v123_v34 = vadd.f32 1e-05, %v121_v33 }
 0x1f2   :  { %173 = vrsqrt.f32 %v123_v34 }
 0x1fb   :  { %v172_v35 = vpop.eup %171 }
 0x1fc   :  { %v126_v37 = vmul.f32 %v172_v35, %v110_v21 }
 0x1fe   :  { %v134_v39 = vmul.f32 %v154_v36, %v126_v37 }
 0x1ff   :  { %v174_v40 = vpop.eup %173 }
 0x200   :  { %v142_v41 = vadd.f32 %v155_v38, %v134_v39  ;;  %v127_v42 = vmul.f32 %v174_v40, %v111_v25 }
 0x202   :  { %144 = vst.msk [vmem:[%s258_s6] sm:$0xff] %vm50_vm1, %v142_v41  ;;  %v135_v43 = vmul.f32 %v154_v36, %v127_v42 }
 0x204   :  { %v143_v44 = vadd.f32 %v155_v38, %v135_v43 }
 0x206   :  { %145 = vst.msk [vmem:[%s258_s6 + $0x8] sm:$0xff] %vm50_vm1, %v143_v44 }

// kernel: encoder_layer1_forward.5
= control target key start
LH: loop header
LB: loop body
LE: loop exit
PB: predicated region body
PF: predicated region fallthrough
CT: control target
= control target key end

     0   :  { %s1068_s0 = inlined_call_operand.vmem [shape: f32[2,4,8,8], index: 0, kind: input, shape index: {}]   ;;  %s1069_s1 = inlined_call_operand.vmem [shape: f32[2,4,8,8], index: 1, kind: input, shape index: {}]   ;;  %s1070_s2 = inlined_call_operand.vmem [shape: f32[2,4,8,8], index: 2, kind: input, shape index: {}]   ;;  %s1071_s3 = inlined_call_operand.vmem [shape: f32[2,4,8,8], index: 3, kind: input, shape index: {}]   ;;  %s1072_s4 = inlined_call_operand.vmem [shape: f32[2,4,8,8], index: 4, kind: output, shape index: {0}]   ;;  %s1073_s5 = inlined_call_operand.hbm [shape: f32[2,4,8,8], index: 5, kind: output, shape index: {1}]  }
   0x1   :  { %1074 = sst [smem:[#allocation5_spill]] %s1068_s0 }
   0x2   :  { %1075 = sst [smem:[#allocation6_spill]] %s1069_s1 }
   0x3   :  { %1076 = sst [smem:[#allocation7_spill]] %s1070_s2 }
   0x4   :  { %11 = vsyncpa [#allocation3], 0 }
   0x5   :  { %13 = vsyncpa [#allocation3 + $0x1], 0  ;;  %s918_s18 = smov 0   ;;  %s920_s19 = smov 0  }
   0x6   :  { %s922_s20 = smov 0   ;;  %s924_s21 = smov 0  }
   0x7   :  { %s926_s22 = smov 0   ;;  %s928_s23 = smov 0  }
   0x8   :  { %s930_s24 = smov 0   ;;  %s932_s25 = smov 0  }
   0x9 LB: > { %s675_s26 = sadd.s32 4294967295, %s883_s25   ;;  %s676_s27 = sadd.s32 4294967294, %s883_s25   ;;  %s883_s25 = sphi %s932_s25, %s19_s25   ;;  %s879_s24 = sphi %s930_s24, %s1088_s24   ;;  %s875_s23 = sphi %s928_s23, %s1087_s23   ;;  %s871_s22 = sphi %s926_s22, %s1086_s22   ;;  %s867_s21 = sphi %s924_s21, %s1085_s21   ;;  %s863_s20 = sphi %s922_s20, %s1084_s20   ;;  %s859_s19 = sphi %s920_s19, %s1083_s19   ;;  %s855_s18 = sphi %s918_s18, %s1082_s18  }
   0xa   : > { %s28_s28 = sadd.s32 1, %s875_s23  ;;  %s31_s29 = sadd.s32 1, %s879_s24 }
   0xb   : > { %p29_p0 = scmp.ge.s32.totalorder %s28_s28, 4  ;;  %p190_p1 = scmp.ne.s32.totalorder %s863_s20, %s859_s19 }
   0xc   : > { %p191_p2 = scmp.eq.s32.totalorder %s675_s26, 7  ;;  %p196_p5 = scmp.ne.s32.totalorder %s859_s19, %s855_s18 }
   0xd   : > { %s1090_s28 = smov (%p29_p0, %s28_s28), 0  ;;  %s1092_s29 = smov (!%p29_p0, %s31_s29), %s879_s24 }
   0xe   : > { %s176_s30 = ssub.s32 %s875_s23, %s1090_s28  ;;  %p969_p3 = por %p191_p2, %p190_p1 }
   0xf   : > { %p33_p4 = scmp.ge.s32.totalorder %s1092_s29, 2  ;;  %p197_p6 = scmp.eq.s32.totalorder %s676_s27, 7 }
  0x10   : > { %p679_p7 = scmp.ge.s32.totalorder %s883_s25, 1  ;;  %p259_p9 = scmp.lt.s32.totalorder %s883_s25, 9 }
  0x11   : > { %s1094_s29 = smov (%p33_p4, %s1092_s29), 0  ;;  %p978_p8 = por %p197_p6, %p196_p5 }
  0x12   : > { %s175_s8 = ssub.s32 %s879_s24, %s1094_s29  ;;  %s180_s9 = sadd.s32 1, %s863_s20 }
  0x13   : > { %s177_s10 = sor.u32 %s176_s30, %s175_s8  ;;  %p260_p10 = pnand %p679_p7, %p259_p9 }
  0x14   : > { %p178_p11 = scmp.eq.s32.totalorder %s177_s10, 0  ;;  %p322_p12 = scmp.lt.s32.totalorder (!%p260_p10), %s871_s22, 1 }
  0x15   : > { %263 = sbr.rel (%p260_p10) target bundleno = 753 (0x2f1), region = 36  ;;  %p324_p13 = scmp.lt.s32.totalorder (!%p260_p10), %s867_s21, 3 }
  0x16   : > { %s987_s11 = scalar_select %p178_p11, %s863_s20, %s180_s9  }
  0x17   : > { %s1079_s1 = sld [smem:[#allocation6_spill]] (!%p260_p10)  ;;  %s319_s26 = sand.u32 (!%p260_p10), 1, %s859_s19  }
  0x18   : > { %s1080_s0 = sld [smem:[#allocation5_spill]] (!%p260_p10)  ;;  %s694_s8 = sshll.u32 (!%p260_p10), %s871_s22, 2 }
  0x19   : > { %s1081_s2 = sld [smem:[#allocation7_spill]] (!%p260_p10) }
  0x1a   : > { %v885_v0 = vmov 0.0   ;;  %vm886_vm0 = vmmov 0   ;;  %s323_s12 = scalar_select %p322_p12, %s871_s22, 1  ;;  %vm369_vm1 = vcmask 64512   ;;  %vm435_vm2 = vcmask 1043456  }
  0x1b   : > { %702 = vmatprep.subr.bf16.mxu0 %v885_v0  ;;  %704 = vmatprep.mubr.msk.bf16.mxu0 %vm886_vm0, %v885_v0  ;;  %s325_s13 = scalar_select %p324_p13, %s867_s21, 3 }
  0x1c   : > { %708 = vmatprep.subr.bf16.mxu1 %v885_v0  ;;  %710 = vmatprep.mubr.msk.bf16.mxu1 %vm886_vm0, %v885_v0  ;;  %s681_s14 = sshll.u32 %s323_s12, 2 }
  0x1d   : > { %s327_s15 = sadd.s32 %s681_s14, %s325_s13 }
  0x1e   : > { %s993_s16 = sshll.u32 %s327_s15, 3 }
  0x1f   : > { %s337_s27 = scalar_lea.vmem %s1079_s1, %s993_s16  ;;  %s329_s9 = scalar_lea.vmem %s1080_s0, %s993_s16 }
  0x20   : > { %v365_v1 = vld [vmem:[%s337_s27] sm:$0xff]  ;;  %s353_s13 = scalar_lea.vmem %s1071_s3, %s993_s16  ;;  %s345_s17 = scalar_lea.vmem %s1081_s2, %s993_s16 }
  0x21   : > { %v366_v2 = vpack.c.bf16 %v365_v1, %v365_v1  ;;  %v363_v4 = vld [vmem:[%s329_s9] sm:$0xff]  ;;  %s680_s27 = sshll.u32 %s319_s26, 3  ;;  %s503_s9 = sadd.s32 %s867_s21, %s694_s8 }
  0x22   : > { %v364_v5 = vpack.c.bf16 %v363_v4, %v363_v4  ;;  %v417_v7 = vld [vmem:[%s353_s13] sm:$0xff]  ;;  %s321_s30 = scalar_lea.vmem [#allocation2], %s680_s27  ;;  %s695_s10 = sshll.u32 %s503_s9, 7 }
  0x23   : > { %v374_v3 = vsel %vm369_vm1, %v366_v2, 0  ;;  %v367_v19 = vld [vmem:[%s345_s17] sm:$0xff]  ;;  %s507_s12 = sshll.u32 %s321_s30, 4  ;;  %s505_s15 = scalar_lea.hbm %s1073_s5, %s695_s10  ;;  %s508_s12 = int_to_ptr.vmem [resolvable:$true] %s507_s12 }
  0x24   : > { %703 = vmatpush3.bf16.xpose.msra.mxu0 %v374_v3  ;;  %v368_v20 = vpack.c.bf16 %v367_v19, %v367_v19  ;;  %s489_s17 = scalar_lea.sflag [#allocation3], %s319_s26  ;;  %s791_s0 = scalar_lea.vmem %s508_s12, 128 }
  0x25   : > { %p792_p0 = scmp.ne.s32.totalorder %s508_s12, %s791_s0  ;;  %s887_s27 = smov [#allocation2]  }
  0x26   : > { %v437_v21 = vsel %vm435_vm2, %v368_v20, 0  ;;  %s795_s1 = sshll.u32 %s887_s27, 4  ;;  %s796_s1 = int_to_ptr.vmem [resolvable:$false] %s795_s1 }
  0x27   : > { %709 = vmatpush3.bf16.msra.mxu1 %v437_v21  ;;  %p793_p1 = pnand %p792_p0, %p969_p3  ;;  %s797_s2 = scalar_lea.vmem %s796_s1, 256 }
  0x28   : > { %p798_p4 = scmp.lt.s32.totalorder %s508_s12, %s796_s1  ;;  %p799_p5 = scmp.lt.s32.totalorder %s797_s2, %s791_s0 }
  0x29   : > { %p794_p2 = pneg %p793_p1 }
  0x2a   : > { %p800_p6 = por %p799_p5, %p798_p4 }
  0x2b   : > { %705 = vmatmul.mubr.msk.bf16.vlgmr.msra.gmra.mxu0 %vm369_vm1, %v364_v5 }
  0x2c   : > { %p801_p7 = pnand %p800_p6, %p794_p2 }
  0xeb   : > { %v410_v6 = vpop.f32.mrf.mxu0 }
  0xec   : > { %v416_v8 = vmul.f32 0.35355338, %v410_v6 }
  0xed   : > { %v706_v9 = vpop.f32.mrf.mxu0 }
  0xee   : > { %v418_v10 = vadd.f32 %v417_v7, %v416_v8 }
  0xef   : > { %v413_v11 = vpop.f32.mrf.mxu0 }
  0xf0   : > { %v419_v12 = vsel %vm369_vm1, %v418_v10, -inf }
  0xf1   : > { %420 = vmax.xlane.f32.xlu0 %v419_v12  ;;  %v707_v13 = vpop.f32.mrf.mxu0 }
 0x17a   : > { %v421_v14 = vpop.xlane.xlu0 %420 }
 0x17b   : > { %v422_v15 = vsub.f32 %v418_v10, %v421_v14 }
 0x17d   : > { %v423_v16 = vmul.f32 1.442695, %v422_v15 }
 0x17f   : > { %787 = vpow2.f32 %v423_v16 }
 0x18c   : > { %v788_v17 = vpop.eup %787 }
 0x18d   : > { %v425_v18 = vsel %vm369_vm1, %v788_v17, 0.0 }
 0x18e   : > { %426 = vadd.xlane.f32.xlu0 %v425_v18 }
 0x217   : > { %v427_v22 = vpop.xlane.xlu0 %426 }
 0x218   : > { %789 = vrcp.f32 %v427_v22 }
 0x225   : > { %v790_v23 = vpop.eup %789 }
 0x226   : > { %v429_v24 = vmul.f32 %v790_v23, %v788_v17 }
 0x228   : > { %v431_v25 = vpack.c.bf16 %v429_v24, %v429_v24  ;;  %430 = vst.msk [vmem:[%s321_s30] sm:$0xff] %vm369_vm1, %v429_v24 }
 0x22a   : > { %711 = vmatmul.mubr.msk.bf16.vlgmr.msra.gmra.mxu1 %vm369_vm1, %v431_v25 }
 0x22b   : > { %804 = shalt.err (!%p801_p7)
}
 0x22c   : > { %s805_s21 = scalar_lea.hbm %s505_s15, 128  ;;  %s809_s30 = scalar_lea.hbm %s1073_s5, 1024 }
 0x22d   : > { %p806_p9 = scmp.ne.s32.totalorder %s505_s15, %s805_s21  ;;  %p810_p12 = scmp.lt.s32.totalorder %s505_s15, %s1073_s5 }
 0x22e   : > { %p811_p13 = scmp.lt.s32.totalorder %s809_s30, %s805_s21 }
 0x22f   : > { %p807_p10 = pnand %p806_p9, %p969_p3 }
 0x230   : > { %p812_p0 = por %p811_p13, %p810_p12 }
 0x231   : > { %p808_p11 = pneg %p807_p10 }
 0x233   : > { %p813_p1 = pnand %p812_p0, %p808_p11 }
 0x235   : > { %816 = shalt.err (!%p813_p1)
}
 0x236   : > { %714 = dma.vmem_to_hbm [thread:$0]  (%p969_p3), %s508_s12, 128, %s505_s15, %s489_s17  }
 0x237   : > { %s361_s2 = scalar_lea.vmem %s1072_s4, %s993_s16 }
 0x2ea   : > { %v473_v26 = vpop.f32.mrf.mxu1 }
 0x2eb   : > { %479 = vst.msk [vmem:[%s361_s2] sm:$0xff] %vm369_vm1, %v473_v26 }
 0x2ec   : > { %v712_v27 = vpop.f32.mrf.mxu1 }
 0x2ee   : > { %v476_v28 = vpop.f32.mrf.mxu1 }
 0x2f0   : > { %v713_v29 = vpop.f32.mrf.mxu1 }
 0x2f1 PF: > { %p720_p2 = scmp.ge.s32.totalorder %s883_s25, 2  ;;  %s530_s10 = sand.u32 1, %s855_s18  }
 0x2f2   : > { %s531_s6 = scalar_lea.sflag [#allocation3], %s530_s10 }
 0x2f3   : > { %p717_p4 = pnand %p720_p2, %p978_p8 }
 0x2f5   : > { %p718_p5 = pneg %p717_p4 }
 0x2f7   : > { %850 = dma.done.wait (%p718_p5), %s531_s6, 128  }
 0x2f8   : > { %852 = vsyncadd (%p718_p5), %s531_s6, 4294967168  ;;  %s19_s25 = sadd.s32 1, %s883_s25   ;;  %s1082_s18 = smov %s859_s19 }
 0x2f9   : > { %p16_p3 = scmp.ge.s32.totalorder %s19_s25, 10   ;;  %s1083_s19 = smov %s863_s20 }
 0x2fa   : > { %s1084_s20 = smov %s987_s11  ;;  %s1085_s21 = smov %s875_s23 }
 0x2fb   : > { %s1086_s22 = smov %s879_s24  ;;  %s1087_s23 = smov %s1090_s28 }
 0x2fc   : > { %s1088_s24 = smov %s1094_s29  ;;  %18 = sbr.rel (!%p16_p3) target bundleno = 9 (0x9), region = 92 }
 0x301   :  { %536 = vsyncpa [#allocation3], 1 }
 0x302   :  { %538 = vsyncpa [#allocation3 + $0x1], 1 }

// kernel: encoder_layer1_forward.4
= control target key start
LH: loop header
LB: loop body
LE: loop exit
PB: predicated region body
PF: predicated region fallthrough
CT: control target
= control target key end

     0   :  { %15 = vsyncpa [#allocation3], 0  ;;  %s523_s0 = inlined_call_operand.vmem [shape: f32[16,32], index: 0, kind: input, shape index: {}]   ;;  %s524_s1 = inlined_call_operand.hbm [shape: bf16[32,32], index: 1, kind: input, shape index: {}]   ;;  %s525_s2 = inlined_call_operand.hbm [shape: bf16[32,32], index: 2, kind: input, shape index: {}]   ;;  %s526_s3 = inlined_call_operand.hbm [shape: bf16[32,32], index: 3, kind: input, shape index: {}]   ;;  %s527_s4 = inlined_call_operand.vmem [shape: f32[1,32], index: 4, kind: input, shape index: {}]   ;;  %s528_s5 = inlined_call_operand.vmem [shape: f32[1,32], index: 5, kind: input, shape index: {}]   ;;  %s529_s6 = inlined_call_operand.vmem [shape: f32[1,32], index: 6, kind: input, shape index: {}]   ;;  %s530_s7 = inlined_call_operand.vmem [shape: f32[16,32], index: 7, kind: output, shape index: {0}]   ;;  %s531_s8 = inlined_call_operand.vmem [shape: f32[16,32], index: 8, kind: output, shape index: {1}]   ;;  %s532_s9 = inlined_call_operand.vmem [shape: f32[16,32], index: 9, kind: output, shape index: {2}]  }
   0x1   :  { %16 = vsyncpa [#allocation5], 0  ;;  %s412_s30 = smov [#allocation4]   ;;  %s413_s11 = smov [#allocation2]  }
   0x2   :  { %s36_s10 = sshll.u32 %s412_s30, 4  ;;  %s24_s12 = sshll.u32 %s413_s11, 4  ;;  %s37_s10 = int_to_ptr.vmem [resolvable:$true] %s36_s10  ;;  %s25_s12 = int_to_ptr.vmem [resolvable:$true] %s24_s12 }
   0x3   :  { %s356_s13 = scalar_lea.vmem %s37_s10, 256  ;;  %p361_p1 = scmp.lt.s32.totalorder %s37_s10, %s37_s10 }
   0x4   :  { %p357_p0 = scmp.ne.s32.totalorder %s37_s10, %s356_s13  ;;  %p362_p2 = scmp.lt.s32.totalorder %s356_s13, %s356_s13 }
   0x6   :  { %p363_p3 = por %p362_p2, %p361_p1 }
   0x8   :  { %p364_p4 = pnand %p363_p3, %p357_p0 }
   0xa   :  { %367 = shalt.err (!%p364_p4)
}
   0xb   :  { %s414_s14 = smov 64   ;;  %s415_s15 = smov 4  }
   0xc   :  { %42 = dma.hbm_to_vmem [thread:$0]  %s525_s2, 256, %s37_s10, [#allocation5], %s414_s14, %s414_s14, %s415_s15  }
   0xd   :  { %s376_s18 = scalar_lea.vmem %s25_s12, 256  ;;  %p381_p6 = scmp.lt.s32.totalorder %s25_s12, %s25_s12 }
   0xe   :  { %p377_p5 = scmp.ne.s32.totalorder %s25_s12, %s376_s18  ;;  %p382_p7 = scmp.lt.s32.totalorder %s376_s18, %s376_s18 }
  0x10   :  { %p383_p8 = por %p382_p7, %p381_p6 }
  0x12   :  { %p384_p9 = pnand %p383_p8, %p377_p5 }
  0x14   :  { %387 = shalt.err (!%p384_p9)
}
  0x15   :  { %30 = dma.hbm_to_vmem [thread:$0]  %s524_s1, 256, %s25_s12, [#allocation3], %s414_s14, %s414_s14, %s415_s15  }
  0x16   :  { %s416_s21 = smov [#allocation6]  }
  0x17   :  { %s48_s22 = sshll.u32 %s416_s21, 4  ;;  %s49_s22 = int_to_ptr.vmem [resolvable:$true] %s48_s22 }
  0x18   :  { %s396_s23 = scalar_lea.vmem %s49_s22, 256  ;;  %p401_p11 = scmp.lt.s32.totalorder %s49_s22, %s49_s22 }
  0x19   :  { %p397_p10 = scmp.ne.s32.totalorder %s49_s22, %s396_s23  ;;  %p402_p12 = scmp.lt.s32.totalorder %s396_s23, %s396_s23 }
  0x1b   :  { %p403_p13 = por %p402_p12, %p401_p11 }
  0x1d   :  { %p404_p0 = pnand %p403_p13, %p397_p10 }
  0x1f   :  { %407 = shalt.err (!%p404_p0)
}
  0x20   :  { %54 = dma.hbm_to_vmem [thread:$0]  %s526_s3, 256, %s49_s22, [#allocation5], %s414_s14, %s414_s14, %s415_s15  }
  0x21   :  { %408 = dma.done.wait [#allocation3], 256  }
  0x22   :  { %409 = vsyncadd [#allocation3], 4294967040 }
  0x23   :  { %410 = dma.done.wait [#allocation5], 512  }
  0x24   :  { %411 = vsyncadd [#allocation5], 4294966784  ;;  %v417_v0 = vmov 0.0   ;;  %vm418_vm0 = vmmov 0   ;;  %v342_v1 = vld [vmem:[#allocation2 + $0x8] sm:$0xff]   ;;  %v343_v2 = vld [vmem:[#allocation4 + $0x8] sm:$0xff]  }
  0x25   :  { %311 = vmatprep.subr.bf16.mxu0 %v417_v0  ;;  %319 = vmatprep.subr.bf16.mxu1 %v417_v0  ;;  %v344_v3 = vld [vmem:[#allocation2] sm:$0xff]   ;;  %v72_v5 = vld [vmem:[%s523_s0 + $0x8] sm:$0xff]  ;;  %v345_v6 = vld [vmem:[#allocation4] sm:$0xff]   ;;  %vm97_vm1 = vcmask 261120  }
  0x26   :  { %315 = vmatprep.mubr.msk.bf16.mxu0 %vm418_vm0, %v417_v0  ;;  %323 = vmatprep.mubr.msk.bf16.mxu1 %vm418_vm0, %v417_v0  ;;  %v71_v4 = vld [vmem:[%s523_s0] sm:$0xff]  ;;  %v346_v8 = vld [vmem:[#allocation6 + $0x8] sm:$0xff]  }
  0x27   :  { %312 = vmatpush3.bf16.msra.mxu0 %v342_v1  ;;  %320 = vmatpush3.bf16.msra.mxu1 %v343_v2  ;;  %v73_v7 = vpack.c.bf16 %v72_v5, %v71_v4  ;;  %v347_v9 = vld [vmem:[#allocation6] sm:$0xff]  }
  0x28   :  { %313 = vmatprep.subr.bf16.mxu0 %v417_v0  ;;  %321 = vmatprep.subr.bf16.mxu1 %v417_v0  ;;  %v290_v10 = vld [vmem:[%s527_s4] ss:$0 sm:$0xff] }
  0x29   :  { %v294_v11 = vld [vmem:[%s528_s5] ss:$0 sm:$0xff] }
  0x2a   :  { %v298_v23 = vld [vmem:[%s529_s6] ss:$0 sm:$0xff] }
  0x2b   :  { %314 = vmatpush3.bf16.msra.mxu0 %v344_v3  ;;  %322 = vmatpush3.bf16.msra.mxu1 %v345_v6 }
  0x2c   :  { %327 = vmatprep.subr.bf16.mxu0 %v417_v0 }
  0x2e   :  { %316 = vmatmul.mubr.msk.bf16.vlgmr.msra.gmra.mxu0 %vm97_vm1, %v73_v7  ;;  %324 = vmatmul.mubr.msk.bf16.vlgmr.msra.gmra.mxu1 %vm97_vm1, %v73_v7 }
  0x2f   :  { %328 = vmatpush3.bf16.msra.mxu0 %v346_v8  ;;  %331 = vmatprep.mubr.msk.bf16.mxu0 %vm418_vm0, %v417_v0 }
  0x30   :  { %329 = vmatprep.subr.bf16.mxu0 %v417_v0 }
  0x33   :  { %330 = vmatpush3.bf16.msra.mxu0 %v347_v9 }
  0x36   :  { %332 = vmatmul.mubr.msk.bf16.vlgmr.msra.gmra.mxu0 %vm97_vm1, %v73_v7 }
  0xee   :  { %v135_v12 = vpop.f32.mrf.mxu0  ;;  %v199_v14 = vpop.f32.mrf.mxu1 }
  0xef   :  { %v136_v13 = vadd.f32 %v290_v10, %v135_v12  ;;  %v200_v16 = vadd.f32 %v294_v11, %v199_v14 }
  0xf0   :  { %v317_v15 = vpop.f32.mrf.mxu0  ;;  %v325_v17 = vpop.f32.mrf.mxu1 }
  0xf1   :  { %270 = vst.msk [vmem:[%s530_s7] sm:$0xff] %vm97_vm1, %v136_v13  ;;  %272 = vst.msk [vmem:[%s531_s8] sm:$0xff] %vm97_vm1, %v200_v16 }
  0xf2   :  { %v138_v18 = vpop.f32.mrf.mxu0  ;;  %v202_v20 = vpop.f32.mrf.mxu1 }
  0xf3   :  { %v139_v19 = vadd.f32 %v290_v10, %v138_v18  ;;  %v203_v22 = vadd.f32 %v294_v11, %v202_v20 }
  0xf4   :  { %v318_v21 = vpop.f32.mrf.mxu0  ;;  %v326_v24 = vpop.f32.mrf.mxu1 }
  0xf5   :  { %271 = vst.msk [vmem:[%s530_s7 + $0x8] sm:$0xff] %vm97_vm1, %v139_v19  ;;  %273 = vst.msk [vmem:[%s531_s8 + $0x8] sm:$0xff] %vm97_vm1, %v203_v22 }
  0xf6   :  { %v263_v25 = vpop.f32.mrf.mxu0 }
  0xf7   :  { %v264_v26 = vadd.f32 %v298_v23, %v263_v25 }
  0xf8   :  { %v333_v27 = vpop.f32.mrf.mxu0 }
  0xf9   :  { %274 = vst.msk [vmem:[%s532_s9] sm:$0xff] %vm97_vm1, %v264_v26 }
  0xfa   :  { %v266_v28 = vpop.f32.mrf.mxu0 }
  0xfb   :  { %v267_v29 = vadd.f32 %v298_v23, %v266_v28 }
  0xfc   :  { %v334_v30 = vpop.f32.mrf.mxu0 }
  0xfd   :  { %275 = vst.msk [vmem:[%s532_s9 + $0x8] sm:$0xff] %vm97_vm1, %v267_v29 }
  0xfe   :  { %288 = vsyncpa [#allocation3], 1 }
  0xff   :  { %289 = vsyncpa [#allocation5], 1 }

// kernel: encoder_layer1_forward.7
= control target key start
LH: loop header
LB: loop body
LE: loop exit
PB: predicated region body
PF: predicated region fallthrough
CT: control target
= control target key end

     0   :  { %v354_v1 = vmov 0.0   ;;  %vm355_vm0 = vmmov 0   ;;  %s449_s0 = inlined_call_operand.vmem [shape: f32[16,32], index: 0, kind: input, shape index: {}]   ;;  %s450_s1 = inlined_call_operand.vmem [shape: bf16[32,64], index: 1, kind: input, shape index: {}]   ;;  %s451_s2 = inlined_call_operand.vmem [shape: f32[1,64], index: 2, kind: input, shape index: {}]   ;;  %s452_s3 = inlined_call_operand.vmem [shape: bf16[64,32], index: 3, kind: input, shape index: {}]   ;;  %s453_s4 = inlined_call_operand.vmem [shape: f32[1,32], index: 4, kind: input, shape index: {}]   ;;  %s454_s5 = inlined_call_operand.vmem [shape: f32[1,32], index: 5, kind: input, shape index: {}]   ;;  %s455_s6 = inlined_call_operand.vmem [shape: f32[1,32], index: 6, kind: input, shape index: {}]   ;;  %s456_s7 = inlined_call_operand.hbm [shape: f32[16,32], index: 7, kind: output, shape index: {}]  }
   0x1   :  { %v314_v0 = vld [vmem:[%s450_s1 + $0x8] sm:$0xff]   ;;  %289 = vmatprep.subr.bf16.mxu0 %v354_v1  ;;  %297 = vmatprep.subr.bf16.mxu1 %v354_v1  ;;  %v315_v2 = vld [vmem:[%s450_s1] sm:$0xff]  }
   0x2   :  { %290 = vmatpush3.bf16.msra.mxu0 %v314_v0  ;;  %293 = vmatprep.mubr.msk.bf16.mxu0 %vm355_vm0, %v354_v1  ;;  %v28_v3 = vld [vmem:[%s449_s0] sm:$0xff]  ;;  %v411_v4 = vld [vmem:[%s449_s0 + $0x8] sm:$0xff] }
   0x3   :  { %291 = vmatprep.subr.bf16.mxu0 %v354_v1  ;;  %305 = vmatprep.mubr.msk.bf16.mxu1 %vm355_vm0, %v354_v1  ;;  %v30_v5 = vpack.c.bf16 %v411_v4, %v28_v3 }
   0x4   :  { %12 = vsyncpa [#allocation3], 0  ;;  %vm54_vm1 = vcmask 261120   ;;  %v316_v6 = vld [vmem:[%s452_s3 + $0x18] sm:$0xff]   ;;  %v317_v7 = vld [vmem:[%s452_s3 + $0x10] sm:$0xff]   ;;  %vm149_vm2 = vcmask 523264  }
   0x5   :  { %298 = vmatpush3.bf16.msra.mxu1 %v316_v6  ;;  %v318_v8 = vld [vmem:[%s452_s3 + $0x8] sm:$0xff]   ;;  %v319_v9 = vld [vmem:[%s452_s3] sm:$0xff]   ;;  %s356_s20 = smov [#allocation2]  }
   0x6   :  { %292 = vmatpush3.bf16.msra.mxu0 %v315_v2  ;;  %299 = vmatprep.subr.bf16.mxu1 %v354_v1  ;;  %v269_v10 = vld [vmem:[%s451_s2] ss:$0 sm:$0xff]  ;;  %s258_s21 = sshll.u32 %s356_s20, 4  ;;  %s259_s21 = int_to_ptr.vmem [resolvable:$true] %s258_s21 }
   0x7   :  { %v273_v28 = vld [vmem:[%s453_s4] ss:$0 sm:$0xff]  ;;  %s332_s22 = scalar_lea.vmem %s259_s21, 256  ;;  %p337_p1 = scmp.lt.s32.totalorder %s259_s21, %s259_s21 }
   0x8   :  { %v279_v2 = vld [vmem:[%s454_s5] ss:$0 sm:$0xff]  ;;  %p333_p0 = scmp.ne.s32.totalorder %s259_s21, %s332_s22  ;;  %p338_p2 = scmp.lt.s32.totalorder %s332_s22, %s332_s22 }
   0x9   :  { %294 = vmatmul.mubr.msk.bf16.vlgmr.msra.gmra.mxu0 %vm54_vm1, %v30_v5  ;;  %300 = vmatpush3.bf16.msra.mxu1 %v317_v7 }
   0xa   :  { %301 = vmatprep.subr.bf16.mxu1 %v354_v1  ;;  %p339_p3 = por %p338_p2, %p337_p1 }
   0xc   :  { %p340_p4 = pnand %p339_p3, %p333_p0 }
   0xd   :  { %302 = vmatpush3.bf16.msra.mxu1 %v318_v8 }
   0xe   :  { %303 = vmatprep.subr.bf16.mxu1 %v354_v1 }
  0x11   :  { %304 = vmatpush3.bf16.msra.mxu1 %v319_v9 }
  0xc9   :  { %v92_v11 = vpop.f32.mrf.mxu0 }
  0xca   :  { %v93_v12 = vadd.f32 %v269_v10, %v92_v11 }
  0xcb   :  { %v295_v13 = vpop.f32.mrf.mxu0 }
  0xcc   :  { %v101_v14 = vmul.f32 0.70710677, %v93_v12  ;;  %v99_v22 = vmul.f32 0.5, %v93_v12 }
  0xcd   :  { %v95_v15 = vpop.f32.mrf.mxu0 }
  0xce   :  { %320 = verf.f32 %v101_v14  ;;  %v96_v16 = vadd.f32 %v269_v10, %v95_v15 }
  0xcf   :  { %v296_v17 = vpop.f32.mrf.mxu0 }
  0xd0   :  { %v102_v18 = vmul.f32 0.70710677, %v96_v16  ;;  %v100_v23 = vmul.f32 0.5, %v96_v16 }
  0xd2   :  { %322 = verf.f32 %v102_v18 }
  0xdb   :  { %v321_v19 = vpop.eup %320 }
  0xdc   :  { %v105_v20 = vadd.f32 1.0, %v321_v19 }
  0xde   :  { %v107_v25 = vmul.f32 %v105_v20, %v99_v22 }
  0xdf   :  { %v323_v21 = vpop.eup %322 }
  0xe0   :  { %v106_v24 = vadd.f32 1.0, %v323_v21 }
  0xe2   :  { %v108_v26 = vmul.f32 %v106_v24, %v100_v23 }
  0xe4   :  { %v109_v27 = vpack.c.bf16 %v108_v26, %v107_v25 }
  0xe6   :  { %306 = vmatmul.mubr.msk.bf16.vlgmr.msra.gmra.mxu1 %vm149_vm2, %v109_v27 }
 0x1a6   :  { %v187_v29 = vpop.f32.mrf.mxu1 }
 0x1a7   :  { %v188_v30 = vadd.f32 %v273_v28, %v187_v29 }
 0x1a8   :  { %v307_v31 = vpop.f32.mrf.mxu1 }
 0x1a9   :  { %v196_v32 = vmul.f32 0.70710677, %v188_v30  ;;  %v194_v38 = vmul.f32 0.5, %v188_v30 }
 0x1aa   :  { %v190_v33 = vpop.f32.mrf.mxu1 }
 0x1ab   :  { %324 = verf.f32 %v196_v32  ;;  %v191_v34 = vadd.f32 %v273_v28, %v190_v33 }
 0x1ac   :  { %v308_v35 = vpop.f32.mrf.mxu1 }
 0x1ad   :  { %v197_v36 = vmul.f32 0.70710677, %v191_v34  ;;  %v195_v42 = vmul.f32 0.5, %v191_v34 }
 0x1af   :  { %326 = verf.f32 %v197_v36 }
 0x1b8   :  { %v325_v37 = vpop.eup %324 }
 0x1b9   :  { %v200_v39 = vadd.f32 1.0, %v325_v37 }
 0x1bb   :  { %v202_v40 = vmul.f32 %v200_v39, %v194_v38 }
 0x1bc   :  { %v327_v41 = vpop.eup %326 }
 0x1bd   :  { %v204_v43 = vadd.f32 %v202_v40, %v28_v3  ;;  %v201_v44 = vadd.f32 1.0, %v327_v41 }
 0x1bf   :  { %v208_v45 = vsel %vm54_vm1, %v204_v43, 0.0  ;;  %v203_v46 = vmul.f32 %v201_v44, %v195_v42 }
 0x1c0   :  { %209 = vadd.xlane.f32.xlu0 %v208_v45 }
 0x1c1   :  { %v205_v47 = vadd.f32 %v203_v46, %v411_v4  ;;  %v280_v4 = vld [vmem:[%s455_s6] ss:$0 sm:$0xff] }
 0x1c3   :  { %v211_v48 = vsel %vm54_vm1, %v205_v47, 0.0 }
 0x1c4   :  { %212 = vadd.xlane.f32.xlu0 %v211_v48 }
 0x249   :  { %v210_v49 = vpop.xlane.xlu0 %209 }
 0x24a   :  { %v215_v50 = vmul.f32 0.03125, %v210_v49 }
 0x24c   :  { %v217_v51 = vsub.f32 %v204_v43, %v215_v50 }
 0x24d   :  { %v213_v52 = vpop.xlane.xlu0 %212 }
 0x24e   :  { %v216_v53 = vmul.f32 0.03125, %v213_v52  ;;  %v219_v54 = vmul.f32 %v217_v51, %v217_v51 }
 0x250   :  { %v218_v55 = vsub.f32 %v205_v47, %v216_v53  ;;  %v221_v56 = vsel %vm54_vm1, %v219_v54, 0.0 }
 0x251   :  { %222 = vadd.xlane.f32.xlu1 %v221_v56 }
 0x252   :  { %v220_v57 = vmul.f32 %v218_v55, %v218_v55 }
 0x254   :  { %v224_v58 = vsel %vm54_vm1, %v220_v57, 0.0 }
 0x255   :  { %225 = vadd.xlane.f32.xlu1 %v224_v58 }
 0x2da   :  { %v223_v59 = vpop.xlane.xlu1 %222 }
 0x2db   :  { %v227_v60 = vmul.f32 0.03125, %v223_v59 }
 0x2dd   :  { %v229_v61 = vadd.f32 1e-05, %v227_v60 }
 0x2de   :  { %v226_v62 = vpop.xlane.xlu1 %225 }
 0x2df   :  { %328 = vrsqrt.f32 %v229_v61  ;;  %v228_v63 = vmul.f32 0.03125, %v226_v62 }
 0x2e1   :  { %v230_v0 = vadd.f32 1e-05, %v228_v63 }
 0x2e3   :  { %330 = vrsqrt.f32 %v230_v0 }
 0x2ec   :  { %v329_v1 = vpop.eup %328 }
 0x2ed   :  { %v233_v3 = vmul.f32 %v329_v1, %v217_v51 }
 0x2ef   :  { %v241_v5 = vmul.f32 %v279_v2, %v233_v3 }
 0x2f0   :  { %v331_v6 = vpop.eup %330 }
 0x2f1   :  { %v234_v7 = vmul.f32 %v331_v6, %v218_v55  ;;  %v249_v8 = vadd.f32 %v280_v4, %v241_v5 }
 0x2f3   :  { %v242_v9 = vmul.f32 %v279_v2, %v234_v7  ;;  %251 = vst.msk [vmem:[#allocation2] sm:$0xff] %vm54_vm1, %v249_v8 }
 0x2f5   :  { %v250_v10 = vadd.f32 %v280_v4, %v242_v9 }
 0x2f7   :  { %252 = vst.msk [vmem:[#allocation2 + $0x8] sm:$0xff] %vm54_vm1, %v250_v10 }
 0x2f8   :  { %343 = shalt.err (!%p340_p4)
}
 0x2f9   :  { %s357_s5 = smov 128   ;;  %s358_s6 = smov 8  }
 0x2fa   :  { %264 = dma.vmem_to_hbm [thread:$0]  %s259_s21, 256, %s456_s7, [#allocation3], %s357_s5, %s357_s5, %s358_s6  }
 0x2fb   :  { %352 = dma.done.wait [#allocation3], 256  }
 0x2fc   :  { %353 = vsyncadd [#allocation3], 4294967040 }
 0x2fd   :  { %268 = vsyncpa [#allocation3], 1 }

</bundles_post_ra>
